<compile_context>
chip_gen: v7x
topology: tpu7x:2x2x1
jax: 0.10.0
libtpu: 0.0.40
codegen_flags: <defaults>
</compile_context>

<pallas_src>
import math

import jax
import jax.numpy as jnp
from jax.experimental import pallas as pl
from jax.experimental.pallas import tpu as pltpu

LANE = 128
SUBLANE = 8


def _linear_sigmoid_kernel(x_ref, w_ref, b_ref, o_ref):
    # x_ref: (tbr, R*D_in)      folded-batch input tile
    # w_ref: (R*D_in, R*D_out)  block-diagonal W^T (resident; constant index map)
    # b_ref: (1, R*D_out)       bias tiled R times (resident)
    # o_ref: (tbr, R*D_out)     lane-dense output tile (R*D_out % 128 == 0)
    z = jnp.dot(x_ref[...], w_ref[...], preferred_element_type=jnp.float32)
    z = z + b_ref[...]                                   # VPU: free under the MXU
    o_ref[...] = jax.nn.sigmoid(z).astype(o_ref.dtype)   # EUP: free under the MXU


def prepare_params(w, b):
    """One-time repack of nn.Linear params (call at init, NOT per forward).

    Picks the smallest fold R with R*D_out % 128 == 0 and builds the
    block-diagonal W^T = kron(I_R, W^T) plus an R-tiled bias, so the kernel's
    output is lane-dense at its true width.
    """
    D_out, D_in = w.shape
    R = 1 if D_out % LANE == 0 else LANE // math.gcd(D_out, LANE)
    w_bd = jnp.kron(jnp.eye(R, dtype=w.dtype), w.T)       # (R*D_in, R*D_out)
    b_bd = jnp.tile(b.reshape(1, D_out), (1, R))           # (1, R*D_out)
    return w_bd, b_bd, R, D_out, D_in


def neural_network4_forward(x, params, *, tile_b=4096, two_core_min_steps=True):
    """y = sigmoid(x @ W^T + b) as a single fused Pallas TPU kernel.

    x: (B, D_in) float32; params from prepare_params(w, b).
    Returns (B, D_out) float32.
    """
    w_bd, b_bd, R, D_out, D_in = params
    B = x.shape[0]
    assert x.shape[1] == D_in

    # Pad B to a multiple of the fold only if needed (at most R-1 rows).
    B_p = ((B + R - 1) // R) * R
    if B_p != B:
        x = jnp.pad(x, ((0, B_p - B), (0, 0)))
    Br = B_p // R
    xf = x.reshape(Br, R * D_in)          # free row-major view (no HBM copy)
    lane_in = R * D_in
    lane_out = R * D_out                  # multiple of 128 by construction

    # Folded-batch tile: big enough to amortize per-grid-step cost.
    tbr = min(pl.cdiv(tile_b, R), Br)
    # v7x: keep >= 2 grid steps so ("parallel",) shards across both TensorCores.
    if two_core_min_steps and Br >= 2 * SUBLANE:
        tbr = min(tbr, pl.cdiv(Br, 2))
    tbr = ((tbr + SUBLANE - 1) // SUBLANE) * SUBLANE   # sublane multiple
    if tbr >= Br:
        tbr = Br                          # single block over the full (folded) batch
    grid = (pl.cdiv(Br, tbr),)            # ragged last block handled by Pallas

    out = pl.pallas_call(
        _linear_sigmoid_kernel,
        out_shape=jax.ShapeDtypeStruct((Br, lane_out), x.dtype),
        grid=grid,
        in_specs=[
            pl.BlockSpec((tbr, lane_in), lambda i: (i, 0)),      # x tile over batch
            pl.BlockSpec((lane_in, lane_out), lambda i: (0, 0)),  # W_bd resident
            pl.BlockSpec((1, lane_out), lambda i: (0, 0)),        # bias resident
        ],
        out_specs=pl.BlockSpec((tbr, lane_out), lambda i: (i, 0)),
        compiler_params=pltpu.CompilerParams(
            dimension_semantics=("parallel",),   # shards across TCs on v7x
        ),
    )(xf, w_bd, b_bd)

    # Free row-major view back to (B_p, D_out); slice only if we padded B.
    y = out.reshape(B_p, D_out)
    return y if B_p == B else y[:B]


if __name__ == "__main__":
    # Small shapes consistent with the module: input_dim=32, output_dim=16, batch=8.
    batch, input_dim, output_dim = 8, 32, 16

    key = jax.random.PRNGKey(0)
    kx, kw, kb = jax.random.split(key, 3)

    x = jax.random.normal(kx, (batch, input_dim), dtype=jnp.float32)
    # Deterministic param init (mimics nn.Linear's uniform(-1/sqrt(fan_in), ...)).
    bound = 1.0 / jnp.sqrt(jnp.float32(input_dim))
    w = jax.random.uniform(kw, (output_dim, input_dim), jnp.float32, -bound, bound)
    b = jax.random.uniform(kb, (output_dim,), jnp.float32, -bound, bound)

    params = prepare_params(w, b)          # init-time repack (not per forward call)
    out = neural_network4_forward(x, params)
    out = jax.block_until_ready(out)

    # Cross-check against plain-JAX reference.
    ref = jax.nn.sigmoid(x @ w.T + b)
    assert out.shape == (batch, output_dim)
    assert jnp.allclose(out, ref, atol=1e-5, rtol=1e-5)

    print("KERNEL_OK")
</pallas_src>

<mosaic_0001>
module attributes {stable_mosaic.version = 11 : i64} {
  func.func @_linear_sigmoid_kernel(%arg0: i32, %arg1: memref<1x256xf32, #tpu.memory_space<vmem>>, %arg2: memref<256x128xf32, #tpu.memory_space<vmem>>, %arg3: memref<1x128xf32, #tpu.memory_space<vmem>>, %arg4: memref<1x128xf32, #tpu.memory_space<vmem>>) attributes {dimension_semantics = [#tpu.dimension_semantics<parallel>], iteration_bounds = array<i64: 1>, scalar_prefetch = 0 : i64, scratch_operands = 0 : i64, tpu.core_type = #tpu.core_type<tc>, window_params = [{transform_indices = @transform_0, window_bounds = array<i64: 1, 256>}, {pipeline_mode = #tpu.pipeline_mode<synchronous>, transform_indices = @transform_1, window_bounds = array<i64: 256, 128>}, {pipeline_mode = #tpu.pipeline_mode<synchronous>, transform_indices = @transform_2, window_bounds = array<i64: 1, 128>}, {transform_indices = @transform_3, window_bounds = array<i64: 1, 128>}]} {
    %c0 = arith.constant 0 : index
    %c0_0 = arith.constant 0 : index
    %0 = vector.load %arg1[%c0, %c0_0] : memref<1x256xf32, #tpu.memory_space<vmem>>, vector<1x256xf32>
    %c0_1 = arith.constant 0 : index
    %c0_2 = arith.constant 0 : index
    %1 = vector.load %arg2[%c0_1, %c0_2] : memref<256x128xf32, #tpu.memory_space<vmem>>, vector<256x128xf32>
    %cst = arith.constant dense<0.000000e+00> : vector<1x128xf32>
    %2 = tpu.matmul %0, %1, %cst {dimension_numbers = #tpu.dot_dimension_numbers<[1], [0], [0], [1], [0, 0, 1, 1], [], []>} : vector<1x256xf32>, vector<256x128xf32>, vector<1x128xf32> -> vector<1x128xf32>
    %c0_3 = arith.constant 0 : index
    %c0_4 = arith.constant 0 : index
    %3 = vector.load %arg3[%c0_3, %c0_4] : memref<1x128xf32, #tpu.memory_space<vmem>>, vector<1x128xf32>
    %4 = arith.addf %2, %3 : vector<1x128xf32>
    %5 = arith.negf %4 : vector<1x128xf32>
    %6 = math.exp %5 : vector<1x128xf32>
    %cst_5 = arith.constant 1.000000e+00 : f32
    %7 = vector.broadcast %cst_5 : f32 to vector<1x128xf32>
    %8 = arith.addf %7, %6 : vector<1x128xf32>
    %9 = arith.divf %7, %8 : vector<1x128xf32>
    %c0_6 = arith.constant 0 : index
    %c0_7 = arith.constant 0 : index
    %10 = vector.load %arg4[%c0_6, %c0_7] : memref<1x128xf32, #tpu.memory_space<vmem>>, vector<1x128xf32>
    tpu.vector_store %arg4[%c0_6, %c0_7], %9 {strides = array<i32>} : memref<1x128xf32, #tpu.memory_space<vmem>>, vector<1x128xf32>,
    return
  }
  func.func @transform_0(%arg0: i32) -> (i32, i32) {
    %c0_i32 = arith.constant 0 : i32
    %c0_i32_0 = arith.constant 0 : i32
    return %arg0, %c0_i32 : i32, i32
  }
  func.func @transform_1(%arg0: i32) -> (i32, i32) {
    %c0_i32 = arith.constant 0 : i32
    %c0_i32_0 = arith.constant 0 : i32
    %c0_i32_1 = arith.constant 0 : i32
    return %c0_i32, %c0_i32_0 : i32, i32
  }
  func.func @transform_2(%arg0: i32) -> (i32, i32) {
    %c0_i32 = arith.constant 0 : i32
    %c0_i32_0 = arith.constant 0 : i32
    %c0_i32_1 = arith.constant 0 : i32
    return %c0_i32, %c0_i32_0 : i32, i32
  }
  func.func @transform_3(%arg0: i32) -> (i32, i32) {
    %c0_i32 = arith.constant 0 : i32
    %c0_i32_0 = arith.constant 0 : i32
    return %arg0, %c0_i32 : i32, i32
  }
}

</mosaic_0001>

<bundles_post_ra>
// kernel: tpu_custom_call.1
= control target key start
LH: loop header
LB: loop body
LE: loop exit
PB: predicated region body
PF: predicated region fallthrough
CT: control target
= control target key end

     0   :  { %8 = vsyncpa [#allocation3], 0  ;;  %s399_s0 = inlined_call_operand.hbm [shape: f32[1,256], index: 0, kind: input, shape index: {}]   ;;  %s400_s1 = inlined_call_operand.hbm [shape: f32[256,128], index: 1, kind: input, shape index: {}]   ;;  %s401_s2 = inlined_call_operand.vmem [shape: f32[1,128], index: 2, kind: input, shape index: {}]   ;;  %s402_s3 = inlined_call_operand.hbm [shape: f32[1,128], index: 3, kind: output, shape index: {}]  }
   0x1   :  { %9 = vsyncpa [#allocation6], 0 }
   0x2   :  { %10 = vsyncpa [#allocation4], 0  ;;  %s328_s12 = smov [#allocation2]   ;;  %s329_s14 = smov [#allocation5]  }
   0x3   :  { %s17_s13 = sshll.u32 %s328_s12, 4  ;;  %s26_s15 = sshll.u32 %s329_s14, 4  ;;  %s18_s13 = int_to_ptr.vmem [resolvable:$true] %s17_s13  ;;  %s353_s15 = int_to_ptr.vmem [resolvable:$true] %s26_s15 }
   0x4   :  { %s256_s18 = scalar_lea.hbm %s399_s0, 32 }
   0x5   :  { %p257_p0 = scmp.ne.s32.totalorder %s399_s0, %s256_s18  ;;  %p260_p1 = scmp.lt.u32.totalorder %s256_s18, %s399_s0 }
   0x7   :  { %p262_p2 = pnand %p260_p1, %p257_p0 }
   0x9   :  { %265 = shalt.err (!%p262_p2)
}
   0xa   :  { %s266_s23 = scalar_lea.vmem %s18_s13, 32  ;;  %p271_p4 = scmp.lt.s32.totalorder %s18_s13, %s18_s13 }
   0xb   :  { %p267_p3 = scmp.ne.s32.totalorder %s18_s13, %s266_s23  ;;  %p272_p5 = scmp.lt.s32.totalorder %s266_s23, %s266_s23 }
   0xd   :  { %p273_p6 = por %p272_p5, %p271_p4 }
   0xf   :  { %p274_p7 = pnand %p273_p6, %p267_p3 }
  0x11   :  { %277 = shalt.err (!%p274_p7)
}
  0x12   :  { %20 = dma.hbm_to_vmem [thread:$0]  %s399_s0, 32, %s18_s13, [#allocation3]  }
  0x13   :  { %s278_s28 = scalar_lea.hbm %s400_s1, 4096 }
  0x14   :  { %p279_p8 = scmp.ne.s32.totalorder %s400_s1, %s278_s28  ;;  %p282_p9 = scmp.lt.u32.totalorder %s278_s28, %s400_s1 }
  0x16   :  { %p284_p10 = pnand %p282_p9, %p279_p8 }
  0x18   :  { %287 = shalt.err (!%p284_p10)
}
  0x19   :  { %s288_s6 = scalar_lea.vmem %s353_s15, 4096  ;;  %p293_p12 = scmp.lt.s32.totalorder %s353_s15, %s353_s15 }
  0x1a   :  { %p289_p11 = scmp.ne.s32.totalorder %s353_s15, %s288_s6  ;;  %p294_p13 = scmp.lt.s32.totalorder %s288_s6, %s288_s6 }
  0x1c   :  { %p295_p0 = por %p294_p13, %p293_p12 }
  0x1e   :  { %p296_p1 = pnand %p295_p0, %p289_p11 }
  0x20   :  { %299 = shalt.err (!%p296_p1)
}
  0x21   :  { %s330_s0 = smov 128   ;;  %s331_s7 = smov 8  }
  0x22   :  { %32 = dma.hbm_to_vmem [thread:$0]  %s400_s1, 4096, %s353_s15, [#allocation6], %s330_s0, %s330_s0, %s331_s7  }
  0x23   :  { %322 = dma.done.wait [#allocation3], 32  }
  0x24   :  { %323 = vsyncadd [#allocation3], 4294967264 }
  0x25   :  { %324 = dma.done.wait [#allocation6], 4096  }
  0x26   :  { %325 = vsyncadd [#allocation6], 4294963200  ;;  %v76_v0 = vlaneseq  ;;  %v58_v1 = vld [vmem:[#allocation5 + $0x80] sm:$0xff]  ;;  %v59_v2 = vld [vmem:[#allocation5 + $0x88] sm:$0xff]  ;;  %s332_s11 = smov [#allocation7]  }
  0x27   :  { %v42_v3 = vld [vmem:[#allocation5] sm:$0xff]  ;;  %v215_v4 = vpack.c.bf16 %v59_v2, %v58_v1  ;;  %v43_v5 = vld [vmem:[#allocation5 + $0x8] sm:$0xff]  ;;  %v60_v6 = vld [vmem:[#allocation5 + $0x90] sm:$0xff]  ;;  %s169_s12 = sshll.u32 %s332_s11, 4  ;;  %s170_s12 = int_to_ptr.vmem [resolvable:$true] %s169_s12 }
  0x28   :  { %v61_v7 = vld [vmem:[#allocation5 + $0x98] sm:$0xff]  ;;  %v217_v8 = vpack.c.bf16 %v43_v5, %v42_v3  ;;  %v44_v10 = vld [vmem:[#allocation5 + $0x10] sm:$0xff]  ;;  %v62_v12 = vld [vmem:[#allocation5 + $0xa0] sm:$0xff]  ;;  %v77_v14 = vshrl.u32 %v76_v0, 7  ;;  %s300_s13 = scalar_lea.vmem %s170_s12, 16  ;;  %s304_s14 = scalar_lea.vmem %s170_s12, 32 }
  0x29   :  { %v219_v9 = vpack.c.bf16 %v61_v7, %v60_v6  ;;  %v45_v11 = vld [vmem:[#allocation5 + $0x18] sm:$0xff]  ;;  %216 = vmatprep.subr.bf16.mxu0 %v215_v4  ;;  %v63_v13 = vld [vmem:[#allocation5 + $0xa8] sm:$0xff]  ;;  %v46_v17 = vld [vmem:[#allocation5 + $0x20] sm:$0xff]  ;;  %p301_p2 = scmp.ne.s32.totalorder %s170_s12, %s300_s13  ;;  %p305_p3 = scmp.lt.s32.totalorder %s170_s12, %s170_s12 }
  0x2a   :  { %218 = vmatpush3.bf16.msra.mxu0 %v217_v8  ;;  %v221_v15 = vpack.c.bf16 %v45_v11, %v44_v10  ;;  %v223_v16 = vpack.c.bf16 %v63_v13, %v62_v12  ;;  %v47_v18 = vld [vmem:[#allocation5 + $0x28] sm:$0xff]  ;;  %v64_v19 = vld [vmem:[#allocation5 + $0xb0] sm:$0xff]  ;;  %v65_v20 = vld [vmem:[#allocation5 + $0xb8] sm:$0xff]  ;;  %v82_v21 = vsub.s32 1, %v77_v14  ;;  %v78_v52 = vsub.s32 0, %v77_v14  ;;  %p306_p4 = scmp.lt.s32.totalorder %s304_s14, %s300_s13 }
  0x2b   :  { %220 = vmatprep.subr.bf16.mxu0 %v219_v9  ;;  %v225_v22 = vpack.c.bf16 %v47_v18, %v46_v17  ;;  %v227_v23 = vpack.c.bf16 %v65_v20, %v64_v19  ;;  %v48_v24 = vld [vmem:[#allocation5 + $0x30] sm:$0xff]  ;;  %v49_v25 = vld [vmem:[#allocation5 + $0x38] sm:$0xff]  ;;  %v66_v26 = vld [vmem:[#allocation5 + $0xc0] sm:$0xff] }
  0x2c   :  { %v67_v27 = vld [vmem:[#allocation5 + $0xc8] sm:$0xff]  ;;  %v41_v28 = vld [vmem:[#allocation2] sm:$0x3]  ;;  %v229_v30 = vpack.c.bf16 %v49_v25, %v48_v24  ;;  %v50_v32 = vld [vmem:[#allocation5 + $0x40] sm:$0xff]  ;;  %p307_p5 = por %p306_p4, %p305_p3 }
  0x2d   :  { %v83_v29 = vrot.slane %v41_v28, %v82_v21  ;;  %v231_v31 = vpack.c.bf16 %v67_v27, %v66_v26  ;;  %v51_v33 = vld [vmem:[#allocation5 + $0x48] sm:$0xff]  ;;  %v68_v34 = vld [vmem:[#allocation5 + $0xd0] sm:$0xff]  ;;  %v69_v35 = vld [vmem:[#allocation5 + $0xd8] sm:$0xff]  ;;  %v79_v54 = vrot.slane %v41_v28, %v78_v52 }
  0x2e   :  { %222 = vmatpush3.bf16.msra.mxu0 %v221_v15  ;;  %v233_v36 = vpack.c.bf16 %v51_v33, %v50_v32  ;;  %v235_v37 = vpack.c.bf16 %v69_v35, %v68_v34  ;;  %v52_v38 = vld [vmem:[#allocation5 + $0x50] sm:$0xff]  ;;  %v53_v39 = vld [vmem:[#allocation5 + $0x58] sm:$0xff]  ;;  %v70_v40 = vld [vmem:[#allocation5 + $0xe0] sm:$0xff]  ;;  %p308_p6 = pnand %p307_p5, %p301_p2 }
  0x2f   :  { %224 = vmatprep.subr.bf16.mxu0 %v223_v16  ;;  %150 = vmatprep.mubr.f32.mxu0 %v83_v29  ;;  %v71_v41 = vld [vmem:[#allocation5 + $0xe8] sm:$0xff]  ;;  %v237_v42 = vpack.c.bf16 %v53_v39, %v52_v38  ;;  %v54_v44 = vld [vmem:[#allocation5 + $0x60] sm:$0xff]  ;;  %v72_v46 = vld [vmem:[#allocation5 + $0xf0] sm:$0xff] }
  0x30   :  { %v239_v43 = vpack.c.bf16 %v71_v41, %v70_v40  ;;  %v55_v45 = vld [vmem:[#allocation5 + $0x68] sm:$0xff]  ;;  %v73_v47 = vld [vmem:[#allocation5 + $0xf8] sm:$0xff]  ;;  %v56_v50 = vld [vmem:[#allocation5 + $0x70] sm:$0xff] }
  0x31   :  { %v241_v48 = vpack.c.bf16 %v55_v45, %v54_v44  ;;  %v243_v49 = vpack.c.bf16 %v73_v47, %v72_v46  ;;  %v57_v51 = vld [vmem:[#allocation5 + $0x78] sm:$0xff] }
  0x32   :  { %226 = vmatpush3.bf16.msra.mxu0 %v225_v22  ;;  %v245_v53 = vpack.c.bf16 %v57_v51, %v56_v50  ;;  %v74_v56 = vld [vmem:[%s401_s2] sm:$0x1] }
  0x33   :  { %228 = vmatprep.subr.bf16.mxu0 %v227_v23 }
  0x36   :  { %230 = vmatpush3.bf16.msra.mxu0 %v229_v30 }
  0x37   :  { %232 = vmatprep.subr.bf16.mxu0 %v231_v31 }
  0x3a   :  { %234 = vmatpush3.bf16.msra.mxu0 %v233_v36 }
  0x3b   :  { %236 = vmatprep.subr.bf16.mxu0 %v235_v37 }
  0x3e   :  { %238 = vmatpush3.bf16.msra.mxu0 %v237_v42 }
  0x3f   :  { %240 = vmatprep.subr.bf16.mxu0 %v239_v43 }
  0x42   :  { %242 = vmatpush3.bf16.msra.mxu0 %v241_v48 }
  0x43   :  { %244 = vmatprep.subr.bf16.mxu0 %v243_v49 }
  0x46   :  { %246 = vmatpush3.bf16.msra.mxu0 %v245_v53 }
  0x49   :  { %151 = vmatmul.mubr.f32.vlgmr.msra.gmra.mrb[0].mxu0 %v79_v54 }
 0x11c   :  { %v212_v55 = vpop.f32.mrb[0].mxu0 }
 0x11d   :  { %v213_v57 = vpop.f32.mrb[1].mxu0 }
 0x11e   :  { %v214_v58 = vadd.f32 %v213_v57, %v212_v55 }
 0x120   :  { %v153_v59 = vadd.f32 %v214_v58, %v74_v56 }
 0x122   :  { %v179_v60 = vmul.f32 -1.442695, %v153_v59 }
 0x124   :  { %252 = vpow2.f32 %v179_v60 }
 0x12e   :  { %v253_v61 = vpop.eup %252 }
 0x12f   :  { %v159_v62 = vadd.f32 1.0, %v253_v61 }
 0x131   :  { %254 = vrcp.f32 %v159_v62 }
 0x13b   :  { %v255_v63 = vpop.eup %254 }
 0x13c   :  { %162 = vst [vmem:[#allocation7] sm:$0x1] %v255_v63 }
 0x13d   :  { %311 = shalt.err (!%p308_p6)
}
 0x13e   :  { %s312_s16 = scalar_lea.hbm %s402_s3, 16 }
 0x13f   :  { %p313_p7 = scmp.ne.s32.totalorder %s402_s3, %s312_s16  ;;  %p316_p8 = scmp.lt.u32.totalorder %s312_s16, %s402_s3 }
 0x141   :  { %p318_p9 = pnand %p316_p8, %p313_p7 }
 0x143   :  { %321 = shalt.err (!%p318_p9)
}
 0x144   :  { %172 = dma.vmem_to_hbm [thread:$0]  %s170_s12, 16, %s402_s3, [#allocation4]  }
 0x145   :  { %326 = dma.done.wait [#allocation4], 16  }
 0x146   :  { %327 = vsyncadd [#allocation4], 4294967280 }
 0x147   :  { %176 = vsyncpa [#allocation3], 1 }
 0x148   :  { %177 = vsyncpa [#allocation6], 1 }
 0x149   :  { %178 = vsyncpa [#allocation4], 1 }

</bundles_post_ra>
